<compile_context>
chip_gen: v7x
topology: tpu7x:2x2x1
jax: 0.10.0
libtpu: 0.0.40
codegen_flags: <defaults>
</compile_context>

<pallas_src>
import functools

import jax
import jax.numpy as jnp
from jax.experimental import pallas as pl
from jax.experimental.pallas import tpu as pltpu

_MIB = 1024 * 1024
_LANES = 128
_SUBLANES = 8


def _focal_loss_kernel(logits_ref, target_ref, out_ref, *,
                       n_rows, block_rows, steps_per_core, need_mask):
    """Accumulate sum(per-row NLL) of this core's row blocks into out_ref."""
    p = pl.program_id(0)          # core (parallel) axis
    s = pl.program_id(1)          # row-block (reduction / "arbitrary") axis

    @pl.when(s == 0)
    def _init():
        out_ref[...] = jnp.zeros_like(out_ref)

    x = logits_ref[...].astype(jnp.float32)                 # (TN, C)
    tgt = target_ref[...]                                    # (TN, 1) int32

    # numerically stable log-sum-exp along the class (lane) axis
    m = jnp.max(x, axis=-1, keepdims=True)                   # (TN, 1)
    shifted = x - m                                           # (TN, C)
    lse = jnp.log(jnp.sum(jnp.exp(shifted), axis=-1, keepdims=True))  # (TN, 1)

    # Gather shifted[row, tgt[row]] via a one-hot select (no dynamic gather on
    # TPU).  The class iota is a single (1, C) lane vector broadcast against
    # the (TN, 1) targets -- no full-tile int32 iota per grid step.
    col = jax.lax.broadcasted_iota(jnp.int32, (1, x.shape[-1]), 1)     # (1, C)
    tgt_shift = jnp.sum(jnp.where(col == tgt, shifted, 0.0),
                        axis=-1, keepdims=True)               # (TN, 1)
    nll = lse - tgt_shift                                      # (TN, 1)

    # mask padded rows (ragged last tile and/or the phantom block of the
    # 2-core split); static no-op when the row count divides evenly
    if need_mask:
        blk = p * steps_per_core + s
        row = blk * block_rows + jax.lax.broadcasted_iota(
            jnp.int32, nll.shape, 0)
        nll = jnp.where(row < n_rows, nll, 0.0)

    # broadcast the block sum across the lane-dense (1, 8, 128) output block
    # (unmasked stores); the wrapper reads element [p, 0, 0].
    out_ref[...] += jnp.sum(nll)


def focal_loss(logits, targets, gamma=0.0, eps=1e-07, block_rows=None,
               tile_bytes=2 * _MIB):
    """Pallas implementation of FocalLoss.forward(input, target).

    logits:  (N, C) float array (any float dtype; cast to f32 in-kernel)
    targets: (N,)   int   array of class indices
    returns: scalar float32 loss
    """
    del eps  # defined in the PyTorch __init__ but unused in forward
    n, c = logits.shape
    itemsize = jnp.dtype(logits.dtype).itemsize
    # sublane packing granularity: 8 rows f32, 16 bf16, 32 int8
    pack = max(_SUBLANES, 32 // itemsize)

    # ---- row tile sized by BYTES (~tile_bytes of logits per buffer) --------
    if block_rows is not None:
        tn = int(block_rows)
    else:
        tn = tile_bytes // max(1, c * itemsize)
        tn = min(tn, 8192)        # bound the (tn, 1) int32 target buffers too
    tn = max(pack, (tn // pack) * pack)
    if tn >= n:
        tn = n                    # single full-extent block is always legal

    num_blocks = pl.cdiv(n, tn)
    # Split row blocks across 2 TensorCores (v7x megacore); purely sequential
    # and harmless on single-core generations (v5e / v6e).
    num_cores = 2 if num_blocks >= 2 else 1
    steps = pl.cdiv(num_blocks, num_cores)
    total_blocks = num_cores * steps
    total_rows = total_blocks * tn

    # pad targets so every (tn, 1) block (incl. the phantom one) is in-bounds
    tgt1d = targets.astype(jnp.int32).reshape(n)
    if total_rows > n:
        tgt1d = jnp.pad(tgt1d, (0, total_rows - n))
    tgt2d = tgt1d.reshape(total_rows, 1)

    if total_blocks == num_blocks:
        logits_map = lambda p, s: (p * steps + s, 0)
    else:
        # phantom trailing block: clamp to the last real block (its rows are
        # masked in-kernel) so the logits DMA never goes fully out of bounds
        last = num_blocks - 1
        logits_map = lambda p, s: (jnp.minimum(p * steps + s, last), 0)
    target_map = lambda p, s: (p * steps + s, 0)

    # ---- generation-aware VMEM budget --------------------------------------
    try:
        vmem_cap = int(pltpu.get_tpu_info().vmem_capacity_bytes)
    except Exception:  # interpret mode / older runtimes: assume tightest (v7x)
        vmem_cap = 64 * _MIB
    tgt_tile_vmem = pl.cdiv(tn, _SUBLANES) * _SUBLANES * _LANES * 4
    vmem_needed = 2 * tn * c * itemsize + 2 * tgt_tile_vmem + (1 << 16)
    vmem_limit = int(min(max(2 * vmem_needed, 32 * _MIB), int(vmem_cap * 0.9)))

    kernel = functools.partial(
        _focal_loss_kernel, n_rows=n, block_rows=tn, steps_per_core=steps,
        need_mask=(total_rows != n))

    partial_sums = pl.pallas_call(
        kernel,
        out_shape=jax.ShapeDtypeStruct((num_cores, _SUBLANES, _LANES),
                                       jnp.float32),
        grid_spec=pltpu.PrefetchScalarGridSpec(
            num_scalar_prefetch=0,
            grid=(num_cores, steps),
            in_specs=[
                pl.BlockSpec((tn, c), logits_map),
                pl.BlockSpec((tn, 1), target_map),
            ],
            # constant block index along the reduction axis -> each core's
            # partial sum stays VMEM-resident and hits HBM exactly once
            out_specs=pl.BlockSpec((1, _SUBLANES, _LANES),
                                   lambda p, s: (p, 0, 0)),
        ),
        compiler_params=pltpu.CompilerParams(
            dimension_semantics=("parallel", "arbitrary"),
            vmem_limit_bytes=vmem_limit),
    )(logits, tgt2d)

    # tiny epilogue in plain JAX: mean + focal transform on the per-core sums
    logp = jnp.sum(partial_sums[:, 0, 0]) / jnp.float32(n)
    if gamma == 0.0:
        # (1 - p)**0 == 1 in torch -> plain mean cross-entropy
        return logp
    prob = jnp.exp(-logp)
    return jnp.power(1.0 - prob, jnp.float32(gamma)) * logp


def _focal_loss_ref(logits, targets, gamma=0.0):
    # pure-JAX reference mirroring the PyTorch module
    logits = logits.astype(jnp.float32)
    logprobs = jax.nn.log_softmax(logits, axis=-1)
    nll = -jnp.take_along_axis(
        logprobs, targets[:, None].astype(jnp.int32), axis=-1)[:, 0]
    logp = jnp.mean(nll)
    if gamma == 0.0:
        return logp
    p = jnp.exp(-logp)
    return jnp.power(1.0 - p, jnp.float32(gamma)) * logp


if __name__ == "__main__":
    key = jax.random.PRNGKey(0)
    k1, k2, k3, k4, k5, k6 = jax.random.split(key, 6)

    # small classification-head shapes (single-tile path)
    N, C = 8, 16
    logits = jax.random.normal(k1, (N, C), dtype=jnp.float32)
    targets = jax.random.randint(k2, (N,), 0, C, dtype=jnp.int32)

    gamma = 2.0  # exercises the focal term
    loss = jax.block_until_ready(focal_loss(logits, targets, gamma=gamma))
    ref = _focal_loss_ref(logits, targets, gamma=gamma)
    assert jnp.allclose(loss, ref, rtol=1e-5, atol=1e-5), (loss, ref)

    # default construction (gamma=0) -> plain mean cross-entropy
    loss0 = jax.block_until_ready(focal_loss(logits, targets, gamma=0.0))
    ref0 = _focal_loss_ref(logits, targets, gamma=0.0)
    assert jnp.allclose(loss0, ref0, rtol=1e-5, atol=1e-5), (loss0, ref0)

    # multi-block path with ragged last tile, 2-way core split and a phantom
    # block: N=40, TN=16 -> 3 real blocks -> grid (2, 2)
    N2, C2 = 40, 16
    logits2 = jax.random.normal(k3, (N2, C2), dtype=jnp.float32)
    targets2 = jax.random.randint(k4, (N2,), 0, C2, dtype=jnp.int32)
    loss2 = jax.block_until_ready(
        focal_loss(logits2, targets2, gamma=2.0, block_rows=16))
    ref2 = _focal_loss_ref(logits2, targets2, gamma=2.0)
    assert jnp.allclose(loss2, ref2, rtol=1e-5, atol=1e-5), (loss2, ref2)

    # bf16 logits stay narrow in HBM and are upcast in-kernel
    logits_bf16 = logits2.astype(jnp.bfloat16)
    loss_b = jax.block_until_ready(
        focal_loss(logits_bf16, targets2, gamma=2.0, block_rows=16))
    ref_b = _focal_loss_ref(logits_bf16, targets2, gamma=2.0)
    assert jnp.allclose(loss_b, ref_b, rtol=1e-4, atol=1e-4), (loss_b, ref_b)

    # default byte-sized tiling, row count not a multiple of the sublane pack
    N3, C3 = 25, 8
    logits3 = jax.random.normal(k5, (N3, C3), dtype=jnp.float32)
    targets3 = jax.random.randint(k6, (N3,), 0, C3, dtype=jnp.int32)
    loss3 = jax.block_until_ready(focal_loss(logits3, targets3, gamma=2.0))
    ref3 = _focal_loss_ref(logits3, targets3, gamma=2.0)
    assert jnp.allclose(loss3, ref3, rtol=1e-5, atol=1e-5), (loss3, ref3)

    print("KERNEL_OK")
</pallas_src>

<mosaic_0001>
module attributes {stable_mosaic.version = 11 : i64} {
  func.func @_focal_loss_kernel(%arg0: i32, %arg1: i32, %arg2: memref<8x16xf32, #tpu.memory_space<vmem>>, %arg3: memref<8x1xi32, #tpu.memory_space<vmem>>, %arg4: memref<1x8x128xf32, #tpu.memory_space<vmem>>) attributes {dimension_semantics = [#tpu.dimension_semantics<parallel>, #tpu.dimension_semantics<arbitrary>], iteration_bounds = array<i64: 1, 1>, scalar_prefetch = 0 : i64, scratch_operands = 0 : i64, tpu.core_type = #tpu.core_type<tc>, window_params = [{transform_indices = @transform_0, window_bounds = array<i64: 8, 16>}, {transform_indices = @transform_1, window_bounds = array<i64: 8, 1>}, {transform_indices = @transform_2, window_bounds = array<i64: 1, 8, 128>}]} {
    %c0_i32 = arith.constant 0 : i32
    %0 = arith.cmpi eq, %arg1, %c0_i32 : i32
    %1 = arith.extui %0 : i1 to i32
    %c0_i32_0 = arith.constant 0 : i32
    %2 = arith.cmpi ne, %1, %c0_i32_0 : i32
    scf.if %2 {
      %cst_14 = arith.constant 0.000000e+00 : f32
      %30 = vector.broadcast %cst_14 : f32 to vector<1x8x128xf32>
      %c0_15 = arith.constant 0 : index
      %c0_16 = arith.constant 0 : index
      %c0_17 = arith.constant 0 : index
      %31 = vector.load %arg4[%c0_15, %c0_16, %c0_17] : memref<1x8x128xf32, #tpu.memory_space<vmem>>, vector<1x8x128xf32>
      tpu.vector_store %arg4[%c0_15, %c0_16, %c0_17], %30 {strides = array<i32>} : memref<1x8x128xf32, #tpu.memory_space<vmem>>, vector<1x8x128xf32>,
    } else {
    }
    %c0 = arith.constant 0 : index
    %c0_1 = arith.constant 0 : index
    %3 = vector.load %arg2[%c0, %c0_1] : memref<8x16xf32, #tpu.memory_space<vmem>>, vector<8x16xf32>
    %c0_2 = arith.constant 0 : index
    %c0_3 = arith.constant 0 : index
    %4 = vector.load %arg3[%c0_2, %c0_3] : memref<8x1xi32, #tpu.memory_space<vmem>>, vector<8x1xi32>
    %cst = arith.constant dense<0xFF800000> : vector<8xf32>
    %5 = vector.multi_reduction <maximumf>, %3, %cst [1] : vector<8x16xf32> to vector<8xf32>
    %6 = vector.shape_cast %5 : vector<8xf32> to vector<8x1xf32>
    %7 = vector.broadcast %6 : vector<8x1xf32> to vector<8x16xf32>
    %8 = arith.subf %3, %7 : vector<8x16xf32>
    %9 = math.exp %8 : vector<8x16xf32>
    %cst_4 = arith.constant dense<0.000000e+00> : vector<8xf32>
    %10 = vector.multi_reduction <add>, %9, %cst_4 [1] : vector<8x16xf32> to vector<8xf32>
    %11 = vector.shape_cast %10 : vector<8xf32> to vector<8x1xf32>
    %12 = math.log %11 : vector<8x1xf32>
    %13 = tpu.iota {dimensions = array<i32: 1>} : vector<1x16xi32>
    %14 = vector.broadcast %13 : vector<1x16xi32> to vector<8x16xi32>
    %15 = vector.broadcast %4 : vector<8x1xi32> to vector<8x16xi32>
    %16 = arith.cmpi eq, %14, %15 : vector<8x16xi32>
    %cst_5 = arith.constant 0.000000e+00 : f32
    %17 = vector.broadcast %cst_5 : f32 to vector<8x16xf32>
    %18 = arith.select %16, %8, %17 : vector<8x16xi1>, vector<8x16xf32>
    %cst_6 = arith.constant dense<0.000000e+00> : vector<8xf32>
    %19 = vector.multi_reduction <add>, %18, %cst_6 [1] : vector<8x16xf32> to vector<8xf32>
    %20 = vector.shape_cast %19 : vector<8xf32> to vector<8x1xf32>
    %21 = arith.subf %12, %20 : vector<8x1xf32>
    %c0_7 = arith.constant 0 : index
    %c0_8 = arith.constant 0 : index
    %c0_9 = arith.constant 0 : index
    %22 = vector.load %arg4[%c0_7, %c0_8, %c0_9] : memref<1x8x128xf32, #tpu.memory_space<vmem>>, vector<1x8x128xf32>
    %23 = vector.shape_cast %21 : vector<8x1xf32> to vector<1x8x1xf32>
    %cst_10 = arith.constant dense<0.000000e+00> : vector<1xf32>
    %24 = vector.multi_reduction <add>, %23, %cst_10 [1, 2] : vector<1x8x1xf32> to vector<1xf32>
    %25 = vector.shape_cast %24 : vector<1xf32> to vector<1x1x1xf32>
    %26 = vector.extract %25[0, 0, 0] : f32 from vector<1x1x1xf32>
    %27 = vector.broadcast %26 : f32 to vector<1x8x128xf32>
    %28 = arith.addf %22, %27 : vector<1x8x128xf32>
    %c0_11 = arith.constant 0 : index
    %c0_12 = arith.constant 0 : index
    %c0_13 = arith.constant 0 : index
    %29 = vector.load %arg4[%c0_11, %c0_12, %c0_13] : memref<1x8x128xf32, #tpu.memory_space<vmem>>, vector<1x8x128xf32>
    tpu.vector_store %arg4[%c0_11, %c0_12, %c0_13], %28 {strides = array<i32>} : memref<1x8x128xf32, #tpu.memory_space<vmem>>, vector<1x8x128xf32>,
    return
  }
  func.func @transform_0(%arg0: i32, %arg1: i32) -> (i32, i32) {
    %c1_i32 = arith.constant 1 : i32
    %0 = arith.muli %arg0, %c1_i32 : i32
    %1 = arith.addi %0, %arg1 : i32
    %c0_i32 = arith.constant 0 : i32
    %c0_i32_0 = arith.constant 0 : i32
    return %1, %c0_i32 : i32, i32
  }
  func.func @transform_1(%arg0: i32, %arg1: i32) -> (i32, i32) {
    %c1_i32 = arith.constant 1 : i32
    %0 = arith.muli %arg0, %c1_i32 : i32
    %1 = arith.addi %0, %arg1 : i32
    %c0_i32 = arith.constant 0 : i32
    %c0_i32_0 = arith.constant 0 : i32
    return %1, %c0_i32 : i32, i32
  }
  func.func @transform_2(%arg0: i32, %arg1: i32) -> (i32, i32, i32) {
    %c0_i32 = arith.constant 0 : i32
    %c0_i32_0 = arith.constant 0 : i32
    %c0_i32_1 = arith.constant 0 : i32
    return %arg0, %c0_i32, %c0_i32_0 : i32, i32, i32
  }
}

</mosaic_0001>

<bundles_post_ra>
// kernel: tpu_custom_call.1
= control target key start
LH: loop header
LB: loop body
LE: loop exit
PB: predicated region body
PF: predicated region fallthrough
CT: control target
= control target key end

     0   :  { %vm53_vm0 = vcmask 130048   ;;  %s189_s0 = inlined_call_operand.vmem [shape: f32[8,16], index: 0, kind: input, shape index: {}]   ;;  %s190_s1 = inlined_call_operand.vmem [shape: s32[8,1], index: 1, kind: input, shape index: {}]   ;;  %s191_s2 = inlined_call_operand.hbm [shape: f32[1,8,128], index: 2, kind: output, shape index: {}]  }
   0x1   :  { %v51_v0 = vld [vmem:[%s189_s0] sm:$0xff] }
   0x2   :  { %7 = vsyncpa [#allocation3], 0  ;;  %v54_v1 = vsel %vm53_vm0, %v51_v0, -inf  ;;  %v151_v2 = vmov 0   ;;  %v52_v3 = vld [vmem:[%s190_s1] sm:$0xff]  ;;  %v65_v7 = vlaneseq  ;;  %vm77_vm2 = vcmask 7168  }
   0x3   :  { %122 = vset.pattern.permute.xlu0 %v151_v2  ;;  %s152_s0 = smov [#allocation2]  }
   0x4   :  { %55 = vmax.xlane.f32.xlu0 %v54_v1  ;;  %v66_v8 = vand.u32 127, %v65_v7  ;;  %s97_s1 = sshll.u32 %s152_s0, 4  ;;  %s98_s1 = int_to_ptr.vmem [resolvable:$true] %s97_s1 }
   0x5   :  { %s127_s14 = scalar_lea.vmem %s98_s1, 128  ;;  %p132_p1 = scmp.lt.s32.totalorder %s98_s1, %s98_s1 }
   0x6   :  { %p128_p0 = scmp.ne.s32.totalorder %s98_s1, %s127_s14  ;;  %p133_p2 = scmp.lt.s32.totalorder %s127_s14, %s127_s14 }
   0x8   :  { %p134_p3 = por %p133_p2, %p132_p1 }
   0xa   :  { %p135_p4 = pnand %p134_p3, %p128_p0 }
  0x1a   :  { %68 = vperm.xlu0 %122, %v52_v3  }
  0x91   :  { %v56_v4 = vpop.xlane.xlu0 %55 }
  0x92   :  { %v57_v5 = vsub.f32 %v51_v0, %v56_v4 }
  0x94   :  { %v58_v6 = vmul.f32 1.442695, %v57_v5 }
  0x96   :  { %123 = vpow2.f32 %v58_v6 }
  0x99   :  { %v69_v9 = vpop.permute.xlu0 %68 }
  0x9a   :  { %vm70_vm1 = vcmp.eq.s32.totalorder %v66_v8, %v69_v9 }
  0x9b   :  { %v71_v12 = vsel %vm70_vm1, %v57_v5, 0.0 }
  0x9c   :  { %v72_v13 = vsel %vm53_vm0, %v71_v12, 0.0 }
  0xa0   :  { %v124_v10 = vpop.eup %123 }
  0xa1   :  { %v60_v11 = vsel %vm53_vm0, %v124_v10, 0.0 }
  0xa2   :  { %61 = vadd.xlane.f32.xlu1 %v60_v11 }
  0xa6   :  { %73 = vadd.xlane.f32.xlu1 %v72_v13 }
 0x12f   :  { %v62_v14 = vpop.xlane.xlu1 %61 }
 0x130   :  { %125 = vlog2.f32 %v62_v14 }
 0x133   :  { %v74_v17 = vpop.xlane.xlu1 %73 }
 0x13a   :  { %v126_v15 = vpop.eup %125 }
 0x13b   :  { %v64_v16 = vmul.f32 0.6931472, %v126_v15 }
 0x13d   :  { %v75_v18 = vsub.f32 %v64_v16, %v74_v17 }
 0x13f   :  { %v78_v19 = vsel %vm77_vm2, %v75_v18, 0.0 }
 0x140   :  { %79 = vadd.xlane.f32.xlu1 %v78_v19 }
 0x1cd   :  { %v80_v20 = vpop.xlane.xlu1 %79 }
 0x1ce   :  { %v81_v21 = vrot.slane %v80_v20, 4 }
 0x1d0   :  { %v82_v22 = vadd.f32 %v81_v21, %v80_v20 }
 0x1d2   :  { %v83_v23 = vrot.slane %v82_v22, 2 }
 0x1d4   :  { %v84_v24 = vadd.f32 %v83_v23, %v82_v22 }
 0x1d6   :  { %v85_v25 = vrot.slane %v84_v24, 1 }
 0x1d8   :  { %v86_v26 = vadd.f32 %v85_v25, %v84_v24 }
 0x1da   :  { %117 = vpush %v86_v26 }
 0x20b   :  { %s118_s13 = spop %117 }
 0x20c   :  { %v88_v27 = vstv %s118_s13 }
 0x20d   :  { %90 = vst [vmem:[#allocation2] sm:$0xff] %v88_v27 }
 0x20e   :  { %138 = shalt.err (!%p135_p4)
}
 0x20f   :  { %s139_s17 = scalar_lea.hbm %s191_s2, 128 }
 0x210   :  { %p140_p5 = scmp.ne.s32.totalorder %s191_s2, %s139_s17  ;;  %p143_p6 = scmp.lt.u32.totalorder %s139_s17, %s191_s2 }
 0x212   :  { %p145_p7 = pnand %p143_p6, %p140_p5 }
 0x214   :  { %148 = shalt.err (!%p145_p7)
}
 0x215   :  { %100 = dma.vmem_to_hbm [thread:$0]  %s98_s1, 128, %s191_s2, [#allocation3]  }
 0x216   :  { %149 = dma.done.wait [#allocation3], 128  }
 0x217   :  { %150 = vsyncadd [#allocation3], 4294967168 }
 0x218   :  { %104 = vsyncpa [#allocation3], 1 }

</bundles_post_ra>
